<compile_context>
chip_gen: v7x
topology: tpu7x:2x2x1
jax: 0.10.0
libtpu: 0.0.40
codegen_flags: <defaults>
</compile_context>

<pallas_src>
import functools

import jax
import jax.numpy as jnp
from jax import lax
from jax.experimental import pallas as pl
from jax.experimental.pallas import tpu as pltpu

EPS = 1e-5
PAD = 128  # halo width (in lanes) of the a2 scratch; must satisfy W + 1 <= PAD


# ---------------------------------------------------------------------------
# Fused kernel (one grid step == one batch sample)
#   x_ref : (Cin, S)          f32   input sample, S = H*W flat on lanes
#   s1,b1 : (Cin, 1)          f32   folded BN1 scale/shift
#   w1    : (Cout, Cin)       bf16  1x1 conv weight
#   s2,b2 : (Cout, 1)         f32   folded BN2 scale/shift
#   w2    : (9, G, Cout)      bf16  3x3 conv taps, k = dy*3 + dx
#   m_neg : (1, S)            bf16  zero where w == 0     (for dx-1 == -1)
#   m_pos : (1, S)            bf16  zero where w == W-1   (for dx-1 == +1)
#   o_ref : (Cin + G, S)      f32   concatenated output slab
#   a2x   : (Cout, S + 2*PAD) bf16  VMEM scratch, zero halos + a2 interior
# ---------------------------------------------------------------------------
def _dense_layer_kernel(x_ref, s1_ref, b1_ref, w1_ref, s2_ref, b2_ref,
                        w2_ref, mneg_ref, mpos_ref, o_ref, a2x_ref, *, W):
    Cin, S = x_ref.shape
    Cout = w1_ref.shape[0]

    x = x_ref[...]                                              # (Cin, S) f32

    # ---- BN1 + ReLU (f32), cast to bf16 for the MXU ----------------------
    a1 = jnp.maximum(x * s1_ref[...] + b1_ref[...], 0.0)

    # ---- 1x1 conv: (Cout, Cin) @ (Cin, S), f32 accumulation --------------
    h = jnp.dot(w1_ref[...], a1.astype(jnp.bfloat16),
                preferred_element_type=jnp.float32)             # (Cout, S)

    # ---- BN2 + ReLU -------------------------------------------------------
    a2 = jnp.maximum(h * s2_ref[...] + b2_ref[...], 0.0)

    # ---- stage a2 (bf16) in a lane-padded scratch so the 9 taps below are
    #      plain static slices of the ref (in-kernel SAME padding).
    a2x_ref[:, :PAD] = jnp.zeros((Cout, PAD), jnp.bfloat16)      # left halo
    a2x_ref[:, PAD + S:] = jnp.zeros((Cout, PAD), jnp.bfloat16)  # right halo
    a2x_ref[:, PAD:PAD + S] = a2.astype(jnp.bfloat16)            # interior

    m_neg = mneg_ref[...]                                        # (1, S)
    m_pos = mpos_ref[...]                                        # (1, S)

    # ---- 3x3 SAME conv: 9 shifted taps, each (G, Cout) @ (Cout, S) --------
    acc = None
    for k in range(9):                                           # unrolled
        oy, ox = k // 3 - 1, k % 3 - 1
        start = PAD + oy * W + ox                                # static int
        tap = a2x_ref[:, start:start + S]                        # (Cout, S) bf16
        if ox == -1:                                             # cancel row wrap
            tap = tap * m_neg
        elif ox == 1:
            tap = tap * m_pos
        part = jnp.dot(w2_ref[k], tap, preferred_element_type=jnp.float32)
        acc = part if acc is None else acc + part                # (G, S) f32

    # ---- concatenated output slab: [x ; new_features] ---------------------
    o_ref[:Cin, :] = x
    o_ref[Cin:, :] = acc


# ---------------------------------------------------------------------------
# Wrapper (NCHW in / NCHW out, like the PyTorch module) — no transpose, no
# pad, no concat on the wrapper side.
# ---------------------------------------------------------------------------
@jax.jit
def dense_layer_forward(x_nchw, params):
    N, Cin, H, W = x_nchw.shape
    S = H * W
    assert W + 1 <= PAD, "increase PAD for very wide images"

    x = x_nchw.reshape(N, Cin, S).astype(jnp.float32)            # free reshape

    # Fold the (inference-mode) BatchNorms into per-channel scale / shift.
    s1 = params["g1"] / jnp.sqrt(params["v1"] + EPS)
    b1 = params["b1"] - params["m1"] * s1
    s2 = params["g2"] / jnp.sqrt(params["v2"] + EPS)
    b2 = params["b2"] - params["m2"] * s2

    w1 = params["w1"][:, :, 0, 0].astype(jnp.bfloat16)           # (Cout, Cin)
    Cout = w1.shape[0]
    G = params["w2"].shape[0]
    # taps ordered k = dy*3 + dx, each tap (G, Cout)
    w2 = jnp.transpose(params["w2"], (2, 3, 0, 1)).reshape(9, G, Cout)
    w2 = w2.astype(jnp.bfloat16)

    # Column masks cancelling the row-wrap of the +/-1 lane shifts.
    col = jnp.arange(S, dtype=jnp.int32) % W
    m_neg = (col != 0).astype(jnp.bfloat16).reshape(1, S)        # dx offset -1
    m_pos = (col != W - 1).astype(jnp.bfloat16).reshape(1, S)    # dx offset +1

    kernel = functools.partial(_dense_layer_kernel, W=W)

    flops = int(2 * N * S * Cin * Cout + 2 * 9 * N * S * Cout * G)
    bytes_accessed = int(4 * (N * Cin * S + N * (Cin + G) * S)
                         + 2 * (w1.size + w2.size) + 4 * 2 * (Cin + Cout))

    out = pl.pallas_call(
        kernel,
        out_shape=jax.ShapeDtypeStruct((N, Cin + G, S), jnp.float32),
        grid=(N,),
        in_specs=[
            pl.BlockSpec((None, Cin, S), lambda n: (n, 0, 0)),    # x (per sample)
            pl.BlockSpec((Cin, 1), lambda n: (0, 0)),             # s1
            pl.BlockSpec((Cin, 1), lambda n: (0, 0)),             # b1
            pl.BlockSpec((Cout, Cin), lambda n: (0, 0)),          # w1
            pl.BlockSpec((Cout, 1), lambda n: (0, 0)),            # s2
            pl.BlockSpec((Cout, 1), lambda n: (0, 0)),            # b2
            pl.BlockSpec((9, G, Cout), lambda n: (0, 0, 0)),      # w2 taps
            pl.BlockSpec((1, S), lambda n: (0, 0)),               # m_neg
            pl.BlockSpec((1, S), lambda n: (0, 0)),               # m_pos
        ],
        out_specs=pl.BlockSpec((None, Cin + G, S), lambda n: (n, 0, 0)),
        scratch_shapes=[pltpu.VMEM((Cout, S + 2 * PAD), jnp.bfloat16)],
        compiler_params=pltpu.CompilerParams(
            dimension_semantics=("parallel",)),                   # megacore on v7x
        cost_estimate=pl.CostEstimate(flops=flops, transcendentals=0,
                                      bytes_accessed=bytes_accessed),
    )(x, s1.reshape(Cin, 1), b1.reshape(Cin, 1), w1,
      s2.reshape(Cout, 1), b2.reshape(Cout, 1), w2, m_neg, m_pos)

    # TODO(synk): train-mode dropout (dropout_prob > 0) not implemented; eval mode => identity.
    return out.reshape(N, Cin + G, H, W)                          # free reshape


# ---------------------------------------------------------------------------
# Pure-JAX reference (mirrors the PyTorch module in eval mode, f32)
# ---------------------------------------------------------------------------
def reference_forward(x_nchw, params):
    def bn(x, g, b, m, v):
        g, b, m, v = (t[None, :, None, None] for t in (g, b, m, v))
        return (x - m) / jnp.sqrt(v + EPS) * g + b

    a1 = jax.nn.relu(bn(x_nchw, params["g1"], params["b1"], params["m1"], params["v1"]))
    h = lax.conv_general_dilated(a1, params["w1"], (1, 1), "VALID",
                                 dimension_numbers=("NCHW", "OIHW", "NCHW"))
    a2 = jax.nn.relu(bn(h, params["g2"], params["b2"], params["m2"], params["v2"]))
    y = lax.conv_general_dilated(a2, params["w2"], (1, 1), ((1, 1), (1, 1)),
                                 dimension_numbers=("NCHW", "OIHW", "NCHW"))
    return jnp.concatenate([x_nchw, y], axis=1)


# ---------------------------------------------------------------------------
def make_params(key, in_channels, growth_rate, bn_size):
    out_channels = bn_size * growth_rate
    ks = jax.random.split(key, 12)
    p = {
        "g1": 0.5 + jax.random.uniform(ks[0], (in_channels,)),
        "b1": 0.1 * jax.random.normal(ks[1], (in_channels,)),
        "m1": 0.1 * jax.random.normal(ks[2], (in_channels,)),
        "v1": 0.5 + jax.random.uniform(ks[3], (in_channels,)),
        "w1": 0.1 * jax.random.normal(ks[4], (out_channels, in_channels, 1, 1)),
        "g2": 0.5 + jax.random.uniform(ks[5], (out_channels,)),
        "b2": 0.1 * jax.random.normal(ks[6], (out_channels,)),
        "m2": 0.1 * jax.random.normal(ks[7], (out_channels,)),
        "v2": 0.5 + jax.random.uniform(ks[8], (out_channels,)),
        "w2": 0.1 * jax.random.normal(ks[9], (growth_rate, out_channels, 3, 3)),
    }
    return {k: v.astype(jnp.float32) for k, v in p.items()}


if __name__ == "__main__":
    # _DenseLayer1(spatial_dims=2, in_channels=4, growth_rate=8, bn_size=4, dropout_prob=0.0)
    N, Cin, H, W = 2, 4, 16, 16
    growth_rate, bn_size = 8, 4

    key = jax.random.PRNGKey(0)
    kx, kp = jax.random.split(key)
    x = jax.random.normal(kx, (N, Cin, H, W), dtype=jnp.float32)
    params = make_params(kp, Cin, growth_rate, bn_size)

    out = jax.block_until_ready(dense_layer_forward(x, params))
    ref = jax.block_until_ready(reference_forward(x, params))

    assert out.shape == (N, Cin + growth_rate, H, W), out.shape
    # bf16 MXU operands (f32 accumulation) vs f32 reference => relaxed tolerance.
    err = float(jnp.max(jnp.abs(out - ref)))
    assert jnp.allclose(out, ref, atol=3e-2, rtol=3e-2), err
    print("KERNEL_OK")
</pallas_src>

<mosaic_0001>
module attributes {stable_mosaic.version = 11 : i64} {
  func.func @_dense_layer_kernel(%arg0: i32, %arg1: memref<1x4x256xf32, #tpu.memory_space<vmem>>, %arg2: memref<4x1xf32, #tpu.memory_space<vmem>>, %arg3: memref<4x1xf32, #tpu.memory_space<vmem>>, %arg4: memref<32x4xbf16, #tpu.memory_space<vmem>>, %arg5: memref<32x1xf32, #tpu.memory_space<vmem>>, %arg6: memref<32x1xf32, #tpu.memory_space<vmem>>, %arg7: memref<9x8x32xbf16, #tpu.memory_space<vmem>>, %arg8: memref<1x256xbf16, #tpu.memory_space<vmem>>, %arg9: memref<1x256xbf16, #tpu.memory_space<vmem>>, %arg10: memref<1x12x256xf32, #tpu.memory_space<vmem>>, %arg11: memref<32x512xbf16, #tpu.memory_space<vmem>>) attributes {dimension_semantics = [#tpu.dimension_semantics<parallel>], iteration_bounds = array<i64: 2>, scalar_prefetch = 0 : i64, scratch_operands = 1 : i64, tpu.core_type = #tpu.core_type<tc>, window_params = [{transform_indices = @transform_0, window_bounds = array<i64: 1, 4, 256>}, {pipeline_mode = #tpu.pipeline_mode<synchronous>, transform_indices = @transform_1, window_bounds = array<i64: 4, 1>}, {pipeline_mode = #tpu.pipeline_mode<synchronous>, transform_indices = @transform_2, window_bounds = array<i64: 4, 1>}, {pipeline_mode = #tpu.pipeline_mode<synchronous>, transform_indices = @transform_3, window_bounds = array<i64: 32, 4>}, {pipeline_mode = #tpu.pipeline_mode<synchronous>, transform_indices = @transform_4, window_bounds = array<i64: 32, 1>}, {pipeline_mode = #tpu.pipeline_mode<synchronous>, transform_indices = @transform_5, window_bounds = array<i64: 32, 1>}, {pipeline_mode = #tpu.pipeline_mode<synchronous>, transform_indices = @transform_6, window_bounds = array<i64: 9, 8, 32>}, {pipeline_mode = #tpu.pipeline_mode<synchronous>, transform_indices = @transform_7, window_bounds = array<i64: 1, 256>}, {pipeline_mode = #tpu.pipeline_mode<synchronous>, transform_indices = @transform_8, window_bounds = array<i64: 1, 256>}, {transform_indices = @transform_9, window_bounds = array<i64: 1, 12, 256>}]} {
    %c0 = arith.constant 0 : index
    %c0_0 = arith.constant 0 : index
    %c0_1 = arith.constant 0 : index
    %0 = vector.load %arg1[%c0, %c0_0, %c0_1] : memref<1x4x256xf32, #tpu.memory_space<vmem>>, vector<1x4x256xf32>
    %1 = vector.shape_cast %0 : vector<1x4x256xf32> to vector<4x256xf32>
    %c0_2 = arith.constant 0 : index
    %c0_3 = arith.constant 0 : index
    %2 = vector.load %arg2[%c0_2, %c0_3] : memref<4x1xf32, #tpu.memory_space<vmem>>, vector<4x1xf32>
    %3 = vector.broadcast %2 : vector<4x1xf32> to vector<4x256xf32>
    %4 = arith.mulf %1, %3 : vector<4x256xf32>
    %c0_4 = arith.constant 0 : index
    %c0_5 = arith.constant 0 : index
    %5 = vector.load %arg3[%c0_4, %c0_5] : memref<4x1xf32, #tpu.memory_space<vmem>>, vector<4x1xf32>
    %6 = vector.broadcast %5 : vector<4x1xf32> to vector<4x256xf32>
    %7 = arith.addf %4, %6 : vector<4x256xf32>
    %cst = arith.constant 0.000000e+00 : f32
    %8 = vector.broadcast %cst : f32 to vector<4x256xf32>
    %9 = arith.maximumf %7, %8 : vector<4x256xf32>
    %c0_6 = arith.constant 0 : index
    %c0_7 = arith.constant 0 : index
    %10 = vector.load %arg4[%c0_6, %c0_7] : memref<32x4xbf16, #tpu.memory_space<vmem>>, vector<32x4xbf16>
    %11 = arith.truncf %9 : vector<4x256xf32> to vector<4x256xbf16>
    %cst_8 = arith.constant dense<0.000000e+00> : vector<32x256xf32>
    %12 = tpu.matmul %10, %11, %cst_8 {dimension_numbers = #tpu.dot_dimension_numbers<[1], [0], [0], [1], [0, 0, 1, 1], [], []>} : vector<32x4xbf16>, vector<4x256xbf16>, vector<32x256xf32> -> vector<32x256xf32>
    %c0_9 = arith.constant 0 : index
    %c0_10 = arith.constant 0 : index
    %13 = vector.load %arg5[%c0_9, %c0_10] : memref<32x1xf32, #tpu.memory_space<vmem>>, vector<32x1xf32>
    %14 = vector.broadcast %13 : vector<32x1xf32> to vector<32x256xf32>
    %15 = arith.mulf %12, %14 : vector<32x256xf32>
    %c0_11 = arith.constant 0 : index
    %c0_12 = arith.constant 0 : index
    %16 = vector.load %arg6[%c0_11, %c0_12] : memref<32x1xf32, #tpu.memory_space<vmem>>, vector<32x1xf32>
    %17 = vector.broadcast %16 : vector<32x1xf32> to vector<32x256xf32>
    %18 = arith.addf %15, %17 : vector<32x256xf32>
    %cst_13 = arith.constant 0.000000e+00 : f32
    %19 = vector.broadcast %cst_13 : f32 to vector<32x256xf32>
    %20 = arith.maximumf %18, %19 : vector<32x256xf32>
    %cst_14 = arith.constant 0.000000e+00 : bf16
    %21 = vector.broadcast %cst_14 : bf16 to vector<32x128xbf16>
    %c0_15 = arith.constant 0 : index
    %c0_16 = arith.constant 0 : index
    %22 = vector.load %arg11[%c0_15, %c0_16] : memref<32x512xbf16, #tpu.memory_space<vmem>>, vector<32x128xbf16>
    tpu.vector_store %arg11[%c0_15, %c0_16], %21 {strides = array<i32>} : memref<32x512xbf16, #tpu.memory_space<vmem>>, vector<32x128xbf16>,
    %cst_17 = arith.constant 0.000000e+00 : bf16
    %23 = vector.broadcast %cst_17 : bf16 to vector<32x128xbf16>
    %c0_18 = arith.constant 0 : index
    %c384 = arith.constant 384 : index
    %24 = vector.load %arg11[%c0_18, %c384] : memref<32x512xbf16, #tpu.memory_space<vmem>>, vector<32x128xbf16>
    tpu.vector_store %arg11[%c0_18, %c384], %23 {strides = array<i32>} : memref<32x512xbf16, #tpu.memory_space<vmem>>, vector<32x128xbf16>,
    %25 = arith.truncf %20 : vector<32x256xf32> to vector<32x256xbf16>
    %c0_19 = arith.constant 0 : index
    %c128 = arith.constant 128 : index
    %26 = vector.load %arg11[%c0_19, %c128] : memref<32x512xbf16, #tpu.memory_space<vmem>>, vector<32x256xbf16>
    tpu.vector_store %arg11[%c0_19, %c128], %25 {strides = array<i32>} : memref<32x512xbf16, #tpu.memory_space<vmem>>, vector<32x256xbf16>,
    %c0_20 = arith.constant 0 : index
    %c0_21 = arith.constant 0 : index
    %27 = vector.load %arg8[%c0_20, %c0_21] : memref<1x256xbf16, #tpu.memory_space<vmem>>, vector<1x256xbf16>
    %c0_22 = arith.constant 0 : index
    %c0_23 = arith.constant 0 : index
    %28 = vector.load %arg9[%c0_22, %c0_23] : memref<1x256xbf16, #tpu.memory_space<vmem>>, vector<1x256xbf16>
    %c0_24 = arith.constant 0 : index
    %c111 = arith.constant 111 : index
    %29 = vector.load %arg11[%c0_24, %c111] : memref<32x512xbf16, #tpu.memory_space<vmem>>, vector<32x256xbf16>
    %30 = vector.broadcast %27 : vector<1x256xbf16> to vector<32x256xbf16>
    %31 = arith.mulf %29, %30 : vector<32x256xbf16>
    %c0_25 = arith.constant 0 : index
    %c0_26 = arith.constant 0 : index
    %c0_27 = arith.constant 0 : index
    %32 = vector.load %arg7[%c0_25, %c0_26, %c0_27] : memref<9x8x32xbf16, #tpu.memory_space<vmem>>, vector<1x8x32xbf16>
    %33 = vector.shape_cast %32 : vector<1x8x32xbf16> to vector<8x32xbf16>
    %cst_28 = arith.constant dense<0.000000e+00> : vector<8x256xf32>
    %34 = tpu.matmul %33, %31, %cst_28 {dimension_numbers = #tpu.dot_dimension_numbers<[1], [0], [0], [1], [0, 0, 1, 1], [], []>} : vector<8x32xbf16>, vector<32x256xbf16>, vector<8x256xf32> -> vector<8x256xf32>
    %c0_29 = arith.constant 0 : index
    %c112 = arith.constant 112 : index
    %35 = vector.load %arg11[%c0_29, %c112] : memref<32x512xbf16, #tpu.memory_space<vmem>>, vector<32x256xbf16>
    %c1 = arith.constant 1 : index
    %c0_30 = arith.constant 0 : index
    %c0_31 = arith.constant 0 : index
    %36 = vector.load %arg7[%c1, %c0_30, %c0_31] : memref<9x8x32xbf16, #tpu.memory_space<vmem>>, vector<1x8x32xbf16>
    %37 = vector.shape_cast %36 : vector<1x8x32xbf16> to vector<8x32xbf16>
    %cst_32 = arith.constant dense<0.000000e+00> : vector<8x256xf32>
    %38 = tpu.matmul %37, %35, %cst_32 {dimension_numbers = #tpu.dot_dimension_numbers<[1], [0], [0], [1], [0, 0, 1, 1], [], []>} : vector<8x32xbf16>, vector<32x256xbf16>, vector<8x256xf32> -> vector<8x256xf32>
    %39 = arith.addf %34, %38 : vector<8x256xf32>
    %c0_33 = arith.constant 0 : index
    %c113 = arith.constant 113 : index
    %40 = vector.load %arg11[%c0_33, %c113] : memref<32x512xbf16, #tpu.memory_space<vmem>>, vector<32x256xbf16>
    %41 = vector.broadcast %28 : vector<1x256xbf16> to vector<32x256xbf16>
    %42 = arith.mulf %40, %41 : vector<32x256xbf16>
    %c2 = arith.constant 2 : index
    %c0_34 = arith.constant 0 : index
    %c0_35 = arith.constant 0 : index
    %43 = vector.load %arg7[%c2, %c0_34, %c0_35] : memref<9x8x32xbf16, #tpu.memory_space<vmem>>, vector<1x8x32xbf16>
    %44 = vector.shape_cast %43 : vector<1x8x32xbf16> to vector<8x32xbf16>
    %cst_36 = arith.constant dense<0.000000e+00> : vector<8x256xf32>
    %45 = tpu.matmul %44, %42, %cst_36 {dimension_numbers = #tpu.dot_dimension_numbers<[1], [0], [0], [1], [0, 0, 1, 1], [], []>} : vector<8x32xbf16>, vector<32x256xbf16>, vector<8x256xf32> -> vector<8x256xf32>
    %46 = arith.addf %39, %45 : vector<8x256xf32>
    %c0_37 = arith.constant 0 : index
    %c127 = arith.constant 127 : index
    %47 = vector.load %arg11[%c0_37, %c127] : memref<32x512xbf16, #tpu.memory_space<vmem>>, vector<32x256xbf16>
    %48 = vector.broadcast %27 : vector<1x256xbf16> to vector<32x256xbf16>
    %49 = arith.mulf %47, %48 : vector<32x256xbf16>
    %c3 = arith.constant 3 : index
    %c0_38 = arith.constant 0 : index
    %c0_39 = arith.constant 0 : index
    %50 = vector.load %arg7[%c3, %c0_38, %c0_39] : memref<9x8x32xbf16, #tpu.memory_space<vmem>>, vector<1x8x32xbf16>
    %51 = vector.shape_cast %50 : vector<1x8x32xbf16> to vector<8x32xbf16>
    %cst_40 = arith.constant dense<0.000000e+00> : vector<8x256xf32>
    %52 = tpu.matmul %51, %49, %cst_40 {dimension_numbers = #tpu.dot_dimension_numbers<[1], [0], [0], [1], [0, 0, 1, 1], [], []>} : vector<8x32xbf16>, vector<32x256xbf16>, vector<8x256xf32> -> vector<8x256xf32>
    %53 = arith.addf %46, %52 : vector<8x256xf32>
    %c0_41 = arith.constant 0 : index
    %c128_42 = arith.constant 128 : index
    %54 = vector.load %arg11[%c0_41, %c128_42] : memref<32x512xbf16, #tpu.memory_space<vmem>>, vector<32x256xbf16>
    %c4 = arith.constant 4 : index
    %c0_43 = arith.constant 0 : index
    %c0_44 = arith.constant 0 : index
    %55 = vector.load %arg7[%c4, %c0_43, %c0_44] : memref<9x8x32xbf16, #tpu.memory_space<vmem>>, vector<1x8x32xbf16>
    %56 = vector.shape_cast %55 : vector<1x8x32xbf16> to vector<8x32xbf16>
    %cst_45 = arith.constant dense<0.000000e+00> : vector<8x256xf32>
    %57 = tpu.matmul %56, %54, %cst_45 {dimension_numbers = #tpu.dot_dimension_numbers<[1], [0], [0], [1], [0, 0, 1, 1], [], []>} : vector<8x32xbf16>, vector<32x256xbf16>, vector<8x256xf32> -> vector<8x256xf32>
    %58 = arith.addf %53, %57 : vector<8x256xf32>
    %c0_46 = arith.constant 0 : index
    %c129 = arith.constant 129 : index
    %59 = vector.load %arg11[%c0_46, %c129] : memref<32x512xbf16, #tpu.memory_space<vmem>>, vector<32x256xbf16>
    %60 = vector.broadcast %28 : vector<1x256xbf16> to vector<32x256xbf16>
    %61 = arith.mulf %59, %60 : vector<32x256xbf16>
    %c5 = arith.constant 5 : index
    %c0_47 = arith.constant 0 : index
    %c0_48 = arith.constant 0 : index
    %62 = vector.load %arg7[%c5, %c0_47, %c0_48] : memref<9x8x32xbf16, #tpu.memory_space<vmem>>, vector<1x8x32xbf16>
    %63 = vector.shape_cast %62 : vector<1x8x32xbf16> to vector<8x32xbf16>
    %cst_49 = arith.constant dense<0.000000e+00> : vector<8x256xf32>
    %64 = tpu.matmul %63, %61, %cst_49 {dimension_numbers = #tpu.dot_dimension_numbers<[1], [0], [0], [1], [0, 0, 1, 1], [], []>} : vector<8x32xbf16>, vector<32x256xbf16>, vector<8x256xf32> -> vector<8x256xf32>
    %65 = arith.addf %58, %64 : vector<8x256xf32>
    %c0_50 = arith.constant 0 : index
    %c143 = arith.constant 143 : index
    %66 = vector.load %arg11[%c0_50, %c143] : memref<32x512xbf16, #tpu.memory_space<vmem>>, vector<32x256xbf16>
    %67 = vector.broadcast %27 : vector<1x256xbf16> to vector<32x256xbf16>
    %68 = arith.mulf %66, %67 : vector<32x256xbf16>
    %c6 = arith.constant 6 : index
    %c0_51 = arith.constant 0 : index
    %c0_52 = arith.constant 0 : index
    %69 = vector.load %arg7[%c6, %c0_51, %c0_52] : memref<9x8x32xbf16, #tpu.memory_space<vmem>>, vector<1x8x32xbf16>
    %70 = vector.shape_cast %69 : vector<1x8x32xbf16> to vector<8x32xbf16>
    %cst_53 = arith.constant dense<0.000000e+00> : vector<8x256xf32>
    %71 = tpu.matmul %70, %68, %cst_53 {dimension_numbers = #tpu.dot_dimension_numbers<[1], [0], [0], [1], [0, 0, 1, 1], [], []>} : vector<8x32xbf16>, vector<32x256xbf16>, vector<8x256xf32> -> vector<8x256xf32>
    %72 = arith.addf %65, %71 : vector<8x256xf32>
    %c0_54 = arith.constant 0 : index
    %c144 = arith.constant 144 : index
    %73 = vector.load %arg11[%c0_54, %c144] : memref<32x512xbf16, #tpu.memory_space<vmem>>, vector<32x256xbf16>
    %c7 = arith.constant 7 : index
    %c0_55 = arith.constant 0 : index
    %c0_56 = arith.constant 0 : index
    %74 = vector.load %arg7[%c7, %c0_55, %c0_56] : memref<9x8x32xbf16, #tpu.memory_space<vmem>>, vector<1x8x32xbf16>
    %75 = vector.shape_cast %74 : vector<1x8x32xbf16> to vector<8x32xbf16>
    %cst_57 = arith.constant dense<0.000000e+00> : vector<8x256xf32>
    %76 = tpu.matmul %75, %73, %cst_57 {dimension_numbers = #tpu.dot_dimension_numbers<[1], [0], [0], [1], [0, 0, 1, 1], [], []>} : vector<8x32xbf16>, vector<32x256xbf16>, vector<8x256xf32> -> vector<8x256xf32>
    %77 = arith.addf %72, %76 : vector<8x256xf32>
    %c0_58 = arith.constant 0 : index
    %c145 = arith.constant 145 : index
    %78 = vector.load %arg11[%c0_58, %c145] : memref<32x512xbf16, #tpu.memory_space<vmem>>, vector<32x256xbf16>
    %79 = vector.broadcast %28 : vector<1x256xbf16> to vector<32x256xbf16>
    %80 = arith.mulf %78, %79 : vector<32x256xbf16>
    %c8 = arith.constant 8 : index
    %c0_59 = arith.constant 0 : index
    %c0_60 = arith.constant 0 : index
    %81 = vector.load %arg7[%c8, %c0_59, %c0_60] : memref<9x8x32xbf16, #tpu.memory_space<vmem>>, vector<1x8x32xbf16>
    %82 = vector.shape_cast %81 : vector<1x8x32xbf16> to vector<8x32xbf16>
    %cst_61 = arith.constant dense<0.000000e+00> : vector<8x256xf32>
    %83 = tpu.matmul %82, %80, %cst_61 {dimension_numbers = #tpu.dot_dimension_numbers<[1], [0], [0], [1], [0, 0, 1, 1], [], []>} : vector<8x32xbf16>, vector<32x256xbf16>, vector<8x256xf32> -> vector<8x256xf32>
    %84 = arith.addf %77, %83 : vector<8x256xf32>
    %c0_62 = arith.constant 0 : index
    %c0_63 = arith.constant 0 : index
    %c0_64 = arith.constant 0 : index
    %85 = vector.load %arg10[%c0_62, %c0_63, %c0_64] : memref<1x12x256xf32, #tpu.memory_space<vmem>>, vector<1x4x256xf32>
    %86 = vector.shape_cast %85 : vector<1x4x256xf32> to vector<4x256xf32>
    %87 = vector.shape_cast %1 : vector<4x256xf32> to vector<1x4x256xf32>
    tpu.vector_store %arg10[%c0_62, %c0_63, %c0_64], %87 {strides = array<i32>} : memref<1x12x256xf32, #tpu.memory_space<vmem>>, vector<1x4x256xf32>,
    %c0_65 = arith.constant 0 : index
    %c4_66 = arith.constant 4 : index
    %c0_67 = arith.constant 0 : index
    %88 = vector.load %arg10[%c0_65, %c4_66, %c0_67] : memref<1x12x256xf32, #tpu.memory_space<vmem>>, vector<1x8x256xf32>
    %89 = vector.shape_cast %88 : vector<1x8x256xf32> to vector<8x256xf32>
    %90 = vector.shape_cast %84 : vector<8x256xf32> to vector<1x8x256xf32>
    tpu.vector_store %arg10[%c0_65, %c4_66, %c0_67], %90 {strides = array<i32>} : memref<1x12x256xf32, #tpu.memory_space<vmem>>, vector<1x8x256xf32>,
    return
  }
  func.func @transform_0(%arg0: i32) -> (i32, i32, i32) {
    %c0_i32 = arith.constant 0 : i32
    %c0_i32_0 = arith.constant 0 : i32
    %c0_i32_1 = arith.constant 0 : i32
    return %arg0, %c0_i32, %c0_i32_0 : i32, i32, i32
  }
  func.func @transform_1(%arg0: i32) -> (i32, i32) {
    %c0_i32 = arith.constant 0 : i32
    %c0_i32_0 = arith.constant 0 : i32
    %c0_i32_1 = arith.constant 0 : i32
    return %c0_i32, %c0_i32_0 : i32, i32
  }
  func.func @transform_2(%arg0: i32) -> (i32, i32) {
    %c0_i32 = arith.constant 0 : i32
    %c0_i32_0 = arith.constant 0 : i32
    %c0_i32_1 = arith.constant 0 : i32
    return %c0_i32, %c0_i32_0 : i32, i32
  }
  func.func @transform_3(%arg0: i32) -> (i32, i32) {
    %c0_i32 = arith.constant 0 : i32
    %c0_i32_0 = arith.constant 0 : i32
    %c0_i32_1 = arith.constant 0 : i32
    return %c0_i32, %c0_i32_0 : i32, i32
  }
  func.func @transform_4(%arg0: i32) -> (i32, i32) {
    %c0_i32 = arith.constant 0 : i32
    %c0_i32_0 = arith.constant 0 : i32
    %c0_i32_1 = arith.constant 0 : i32
    return %c0_i32, %c0_i32_0 : i32, i32
  }
  func.func @transform_5(%arg0: i32) -> (i32, i32) {
    %c0_i32 = arith.constant 0 : i32
    %c0_i32_0 = arith.constant 0 : i32
    %c0_i32_1 = arith.constant 0 : i32
    return %c0_i32, %c0_i32_0 : i32, i32
  }
  func.func @transform_6(%arg0: i32) -> (i32, i32, i32) {
    %c0_i32 = arith.constant 0 : i32
    %c0_i32_0 = arith.constant 0 : i32
    %c0_i32_1 = arith.constant 0 : i32
    %c0_i32_2 = arith.constant 0 : i32
    return %c0_i32, %c0_i32_0, %c0_i32_1 : i32, i32, i32
  }
  func.func @transform_7(%arg0: i32) -> (i32, i32) {
    %c0_i32 = arith.constant 0 : i32
    %c0_i32_0 = arith.constant 0 : i32
    %c0_i32_1 = arith.constant 0 : i32
    return %c0_i32, %c0_i32_0 : i32, i32
  }
  func.func @transform_8(%arg0: i32) -> (i32, i32) {
    %c0_i32 = arith.constant 0 : i32
    %c0_i32_0 = arith.constant 0 : i32
    %c0_i32_1 = arith.constant 0 : i32
    return %c0_i32, %c0_i32_0 : i32, i32
  }
  func.func @transform_9(%arg0: i32) -> (i32, i32, i32) {
    %c0_i32 = arith.constant 0 : i32
    %c0_i32_0 = arith.constant 0 : i32
    %c0_i32_1 = arith.constant 0 : i32
    return %arg0, %c0_i32, %c0_i32_0 : i32, i32, i32
  }
}

</mosaic_0001>

<bundles_post_ra>
// kernel: dense_layer_forward.1
= control target key start
LH: loop header
LB: loop body
LE: loop exit
PB: predicated region body
PF: predicated region fallthrough
CT: control target
= control target key end

     0   :  { %s1600_s30 = smov 0   ;;  %s1908_s0 = inlined_call_operand.vmem [shape: f32[2,4,256], index: 0, kind: input, shape index: {}]   ;;  %s1909_s1 = inlined_call_operand.vmem [shape: f32[4,1], index: 1, kind: input, shape index: {}]   ;;  %s1910_s2 = inlined_call_operand.vmem [shape: f32[4,1], index: 2, kind: input, shape index: {}]   ;;  %s1911_s3 = inlined_call_operand.vmem [shape: bf16[32,4], index: 3, kind: input, shape index: {}]   ;;  %s1912_s4 = inlined_call_operand.vmem [shape: f32[32,1], index: 4, kind: input, shape index: {}]   ;;  %s1913_s5 = inlined_call_operand.vmem [shape: f32[32,1], index: 5, kind: input, shape index: {}]   ;;  %s1914_s6 = inlined_call_operand.vmem [shape: bf16[9,8,32], index: 6, kind: input, shape index: {}]   ;;  %s1915_s7 = inlined_call_operand.vmem [shape: bf16[1,256], index: 7, kind: input, shape index: {}]   ;;  %s1916_s8 = inlined_call_operand.vmem [shape: bf16[1,256], index: 8, kind: input, shape index: {}]   ;;  %s1917_s9 = inlined_call_operand.vmem [shape: f32[2,12,256], index: 9, kind: output, shape index: {}]  }
   0x1 LB: > { %s1430_s10 = sadd.s32 4294967295, %s1537_s30   ;;  %p1434_p0 = scmp.ge.s32.totalorder %s1537_s30, 1  ;;  %s1537_s30 = sphi %s1600_s30, %s19_s30  }
   0x2   : > { %p287_p1 = scmp.lt.s32.totalorder %s1537_s30, 3 }
   0x4   : > { %p288_p2 = pnand %p1434_p0, %p287_p1 }
   0x5   : > { %v335_v0 = vld [vmem:[%s1909_s1] sm:$0xf] (!%p288_p2)  ;;  %v1539_v1 = vmov (!%p288_p2), 0   ;;  %p323_p3 = scmp.lt.s32.totalorder (!%p288_p2), %s1430_s10, 1  ;;  %v452_v6 = vld [vmem:[%s1912_s4 + $0x10] sm:$0xff] (!%p288_p2)  ;;  %v343_v10 = vlaneseq (!%p288_p2)  ;;  %v451_v16 = vld [vmem:[%s1912_s4 + $0x8] sm:$0xff] (!%p288_p2) }
   0x6   : > { %291 = sbr.rel (%p288_p2) target bundleno = 784 (0x310), region = 56  ;;  %1516 = vset.pattern.permute.xlu0 (!%p288_p2), %v1539_v1  ;;  %429 = vmatprep.mubr.bf16.mxu0 (!%p288_p2), %v1539_v1  ;;  %v349_v2 = vld [vmem:[%s1910_s2] sm:$0xf] (!%p288_p2)  ;;  %v484_v7 = vld [vmem:[%s1913_s5 + $0x10] sm:$0xff] (!%p288_p2)  ;;  %v1540_v8 = vmov (!%p288_p2), 1966171168  }
   0x7   : > { %338 = vperm.xlu0 (!%p288_p2), %1516, %v335_v0   ;;  %1517 = vset.pattern.permute.xlu1 (!%p288_p2), %v1539_v1  ;;  %v482_v3 = vld [vmem:[%s1913_s5] sm:$0xff] (!%p288_p2)  ;;  %v552_v9 = vunpack.c.l.s4 (!%p288_p2), %v1540_v8  ;;  %v344_v12 = vshrl.u32 (!%p288_p2), %v343_v10, 7  ;;  %v483_v24 = vld [vmem:[%s1913_s5 + $0x8] sm:$0xff] (!%p288_p2)  ;;  %s1541_s19 = smov (!%p288_p2), 1   ;;  %v453_v29 = vld [vmem:[%s1912_s4 + $0x18] sm:$0xff] (!%p288_p2)  ;;  %s1542_s22 = smov (!%p288_p2), 111  }
   0x8   : > { %1004 = vmatprep.mubr.bf16.mxu1 (!%p288_p2), %v1539_v1  ;;  %v450_v14 = vld [vmem:[%s1912_s4] sm:$0xff] (!%p288_p2)  ;;  %v485_v32 = vld [vmem:[%s1913_s5 + $0x18] sm:$0xff] (!%p288_p2)  ;;  %s1543_s26 = smov (!%p288_p2), 15   ;;  %s1544_s27 = smov (!%p288_p2), 113   ;;  %v1549_v36 = vmov (!%p288_p2), 839922192  }
   0x9   : > { %v553_v11 = vunpack.c.0.s8 (!%p288_p2), %v552_v9  ;;  %456 = vperm.xlu1 (!%p288_p2), %1517, %v450_v14   ;;  %v1448_v15 = vld.sshfl [vmem:[%s1916_s8] sm:$0x11 pattern:$0x75316420] (!%p288_p2)  ;;  %v570_v20 = vsub.s32 (!%p288_p2), 0, %v344_v12  ;;  %s1545_s28 = smov (!%p288_p2), 127   ;;  %v341_v37 = vunpack.c.l.s4 (!%p288_p2), %v1549_v36 }
   0xa   : > { %v1444_v18 = vld.sshfl [vmem:[%s1915_s7] sm:$0x11 pattern:$0x75316420] (!%p288_p2)  ;;  %v750_v22 = vcombine.high (!%p288_p2), %v1448_v15, %v1448_v15  ;;  %s1546_s29 = smov (!%p288_p2), 17   ;;  %s1548_s11 = smov (!%p288_p2), 112  }
   0xb   : > { %352 = vperm.xlu0 (!%p288_p2), %1516, %v349_v2   ;;  %v556_v13 = vsub.s32 (!%p288_p2), %v553_v11, %v344_v12  ;;  %v550_v28 = vcombine.high (!%p288_p2), %v1444_v18, %v1444_v18  ;;  %v342_v38 = vunpack.c.0.s8 (!%p288_p2), %v341_v37  ;;  %vm390_vm0 = vcmask (!%p288_p2), 1041408   ;;  %v1529_v51 = vld [vmem:[%s1911_s3] sm:$0xff] (!%p288_p2)   ;;  %v1530_v52 = vld [vmem:[%s1911_s3 + $0x8] sm:$0xff] (!%p288_p2)  }
   0xc   : > { %vm383_vm1 = vcmask (!%p288_p2), 31744   ;;  %vm912_vm2 = vcmask (!%p288_p2), 7168   ;;  %vm785_vm3 = vcmask (!%p288_p2), 924672   ;;  %vm585_vm4 = vcmask (!%p288_p2), 908288  }
   0xd   : > { %s1919_s10 = smov (!%p323_p3, %s1430_s10), 1  ;;  %v757_v17 = vrot.slane %v1448_v15, %v556_v13  ;;  %v557_v19 = vrot.slane %v1444_v18, %v556_v13  ;;  %461 = vperm.xlu1 %1517, %v451_v16   ;;  %v764_v27 = vrot.slane %v750_v22, %v556_v13  ;;  %v564_v31 = vrot.slane %v550_v28, %v556_v13 }
   0xe   : > { %s1465_s15 = sshll.u32 %s1919_s10, 3  ;;  %s1466_s16 = sshll.u32 %s1919_s10, 5  ;;  %v345_v39 = vsub.s32 %v342_v38, %v344_v12  ;;  %vm816_vm5 = vcmask 121856   ;;  %vm626_vm6 = vcmask 261120   ;;  %vm881_vm7 = vcmask 1039360  }
   0xf   : > { %s327_s21 = scalar_lea.vmem %s1908_s0, %s1465_s15  ;;  %s1627_s24 = scalar_lea.vmem %s1917_s9, %s1466_s16  ;;  %488 = vperm.xlu0 %1516, %v482_v3   ;;  %v766_v21 = vpack.i.b16 %v757_v17, %v757_v17  ;;  %v566_v23 = vpack.i.b16 %v557_v19, %v557_v19  ;;  %v773_v30 = vpack.i.b16 %v764_v27, %v764_v27  ;;  %v573_v34 = vpack.i.b16 %v564_v31, %v564_v31 }
  0x10   : > { %v1629_v4 = vld [vmem:[%s327_s21] sm:$0xff]  ;;  %s1547_s10 = smov 16   ;;  %vm689_vm8 = vcmask 138240   ;;  %vm617_vm9 = vcmask 130048   ;;  %vm1217_vm10 = vcmask 916480  }
  0x11   : > { %v1361_v5 = vcombine.high %v1629_v4, %v1629_v4  ;;  %1363 = vst [vmem:[%s1627_s24] sm:$0xf] %v1629_v4  ;;  %v771_v25 = vrot.slane %v766_v21, %v570_v20  ;;  %v571_v26 = vrot.slane %v566_v23, %v570_v20  ;;  %493 = vperm.xlu1 %1517, %v483_v24  }
  0x12   : > { %v778_v33 = vrot.slane %v773_v30, %v570_v20  ;;  %v578_v35 = vrot.slane %v573_v34, %v570_v20 }
  0x13   : > { %1364 = vst [vmem:[%s1627_s24 + $0x8] sm:$0xf] %v1361_v5  ;;  %466 = vperm.xlu0 %1516, %v452_v6  }
  0x15   : > { %471 = vperm.xlu1 %1517, %v453_v29  }
  0x17   : > { %498 = vperm.xlu0 %1516, %v484_v7  }
  0x19   : > { %503 = vperm.xlu1 %1517, %v485_v32  }
  0x1b   : > { %1021 = vrot.lane.b32.xlu0 %v771_v25, %s1541_s19 }
  0x1d   : > { %1023 = vrot.lane.b32.xlu1 %v778_v33, %s1541_s19 }
  0x1f   : > { %581 = vrot.lane.b32.xlu0 %v571_v26, %s1542_s22 }
  0x21   : > { %583 = vrot.lane.b32.xlu1 %v578_v35, %s1542_s22 }
  0x23   : > { %1109 = vrot.lane.b32.xlu0 %v571_v26, %s1543_s26 }
  0x25   : > { %1111 = vrot.lane.b32.xlu1 %v578_v35, %s1543_s26 }
  0x27   : > { %781 = vrot.lane.b32.xlu0 %v771_v25, %s1544_s27 }
  0x29   : > { %783 = vrot.lane.b32.xlu1 %v778_v33, %s1544_s27 }
  0x2b   : > { %877 = vrot.lane.b32.xlu0 %v571_v26, %s1545_s28 }
  0x2d   : > { %879 = vrot.lane.b32.xlu1 %v578_v35, %s1545_s28 }
  0x2f   : > { %1272 = vrot.lane.b32.xlu0 %v771_v25, %s1546_s29 }
  0x31   : > { %1274 = vrot.lane.b32.xlu1 %v778_v33, %s1546_s29 }
  0x33   : > { %1519 = vrot.lane.b32.xlu0 %v1539_v1, %s1547_s10 }
  0x37   : > { %1524 = vrot.lane.b32.xlu0 %v1539_v1, %s1548_s11 }
  0x86   : > { %v339_v40 = vpop.permute.xlu0 %338 }
  0x87   : > { %v346_v41 = vrot.slane %v339_v40, %v345_v39 }
  0x88   : > { %v457_v53 = vpop.permute.xlu1 %456 }
  0x89   : > { %v348_v43 = vmul.f32 %v346_v41, %v1629_v4 }
  0x8a   : > { %v353_v42 = vpop.permute.xlu0 %352 }
  0x8b   : > { %v360_v44 = vrot.slane %v353_v42, %v345_v39 }
  0x8c   : > { %v462_v55 = vpop.permute.xlu1 %461 }
  0x8d   : > { %v362_v45 = vadd.f32 %v360_v44, %v348_v43 }
  0x8e   : > { %v489_v54 = vpop.permute.xlu0 %488 }
  0x8f   : > { %v363_v46 = vmax.f32 %v362_v45, 0.0 }
  0x90   : > { %v494_v56 = vpop.permute.xlu1 %493 }
  0x91   : > { %v369_v47 = vcombine.high %v363_v46, %v363_v46  ;;  %v371_v48 = vpack.c.bf16 %v363_v46, %v363_v46 }
  0x92   : > { %v467_v57 = vpop.permute.xlu0 %466 }
  0x93   : > { %v372_v49 = vpack.c.bf16 %v369_v47, %v369_v47  ;;  %v392_v50 = vsel %vm390_vm0, %v371_v48, 0 }
  0x94   : > { %v472_v58 = vpop.permute.xlu1 %471 }
  0x95   : > { %1441 = vmatprep.subr.msk.bf16.mxu0 %vm390_vm0, %v372_v49 }
  0x96   : > { %398 = vmatpush1.bf16.msra.mxu0 %v392_v50  ;;  %v499_v59 = vpop.permute.xlu0 %498 }
  0x98   : > { %v1688_v60 = vpop.permute.xlu1 %503 }
  0x99   : > { %1442 = vmatmul.mubr.msk.bf16.vlgmr.msra.gmra.mrb[0].mxu0 %vm383_vm1, %v1529_v51 }
  0x9a   : > { %439 = vmatprep.mubr.bf16.mxu0 %v1539_v1  ;;  %v1690_v62 = vpop.permute.xlu0 %1021 }
  0x9c   : > { %v1024_v61 = vpop.permute.xlu1 %1023 }
  0x9d   : > { %v1031_v63 = vmul.bf16 0, %v1024_v61  ;;  %v1025_v32 = vsel %vm912_vm2, %v1690_v62, %v1024_v61  ;;  %v1453_v61 = vld [vmem:[%s1914_s6 + $0x10] sm:$0xf] }
  0x9e   : > { %v582_v2 = vpop.permute.xlu0 %581 }
  0x9f   : > { %1047 = vrot.lane.b32.xlu1 %v1031_v63, %s1545_s28  ;;  %v590_v3 = vmul.bf16 0, %v582_v2 }
  0xa0   : > { %v1693_v0 = vpop.permute.xlu1 %583 }
  0xa1   : > { %1443 = vmatmul.mubr.msk.bf16.gmra.mrb[4].mxu0 %vm383_vm1, %v1530_v52  ;;  %v586_v43 = vsel %vm585_vm4, %v582_v2, %v1693_v0 }
  0xa2   : > { %662 = vmatprep.mubr.bf16.mxu0 %v1539_v1  ;;  %v1700_v6 = vpop.permute.xlu0 %1109 }
  0xa3   : > { %1053 = vrot.lane.b32.xlu1 %v1031_v63, %s1545_s28 }
  0xa4   : > { %v1112_v4 = vpop.permute.xlu1 %1111 }
  0xa5   : > { %v1119_v5 = vmul.bf16 0, %v1112_v4  ;;  %v1113_v44 = vsel %vm816_vm5, %v1700_v6, %v1112_v4 }
  0xa6   : > { %v1702_v7 = vpop.permute.xlu0 %781 }
  0xa7   : > { %1135 = vrot.lane.b32.xlu0 %v1119_v5, %s1544_s27  ;;  %677 = vrot.lane.b32.xlu1 %v590_v3, %s1546_s29  ;;  %v790_v8 = vmul.bf16 0, %v1702_v7 }
  0xa8   : > { %v1714_v33 = vpop.permute.xlu1 %783 }
  0xa9   : > { %v786_v37 = vsel %vm785_vm3, %v1702_v7, %v1714_v33 }
  0xaa   : > { %v878_v4 = vpop.permute.xlu0 %877 }
  0xab   : > { %1141 = vrot.lane.b32.xlu0 %v1119_v5, %s1544_s27  ;;  %683 = vrot.lane.b32.xlu1 %v590_v3, %s1546_s29 }
  0xaf   : > { %804 = vrot.lane.b32.xlu1 %v790_v8, %s1543_s26 }
 0x16c   : > { %v431_v9 = vpop.f32.mrb[0].mxu0 }
 0x16d   : > { %v474_v10 = vmul.f32 %v457_v53, %v431_v9  ;;  %v433_v11 = vpop.f32.mrb[1].mxu0 }
 0x16e   : > { %v475_v12 = vmul.f32 %v457_v53, %v433_v11  ;;  %v435_v13 = vpop.f32.mrb[2].mxu0 }
 0x16f   : > { %v506_v14 = vadd.f32 %v489_v54, %v474_v10  ;;  %v476_v15 = vmul.f32 %v462_v55, %v435_v13  ;;  %v437_v16 = vpop.f32.mrb[3].mxu0  ;;  %v1273_v10 = vpop.permute.xlu0 %1272 }
 0x170   : > { %v507_v17 = vadd.f32 %v489_v54, %v475_v12  ;;  %v477_v18 = vmul.f32 %v462_v55, %v437_v16 }
 0x171   : > { %v508_v19 = vadd.f32 %v494_v56, %v476_v15  ;;  %v514_v21 = vmax.f32 %v506_v14, 0.0  ;;  %v886_v15 = vmul.bf16 0, %v878_v4 }
 0x172   : > { %v509_v20 = vadd.f32 %v494_v56, %v477_v18  ;;  %v515_v23 = vmax.f32 %v507_v17, 0.0 }
 0x173   : > { %v516_v22 = vmax.f32 %v508_v19, 0.0 }
 0x174   : > { %v517_v24 = vmax.f32 %v509_v20, 0.0  ;;  %v441_v25 = vpop.f32.mrb[4].mxu0 }
 0x175   : > { %v1708_v26 = vpack.c.bf16 %v516_v22, %v514_v21  ;;  %v478_v27 = vmul.f32 %v467_v57, %v441_v25  ;;  %v443_v28 = vpop.f32.mrb[5].mxu0  ;;  %v1520_v22 = vpop.permute.xlu0 %1519 }
 0x176   : > { %v1710_v29 = vpack.c.bf16 %v517_v24, %v515_v23  ;;  %v479_v30 = vmul.f32 %v467_v57, %v443_v28  ;;  %v445_v31 = vpop.f32.mrb[6].mxu0 }
 0x177   : > { %v510_v34 = vadd.f32 %v499_v59, %v478_v27  ;;  %v480_v35 = vmul.f32 %v472_v58, %v445_v31  ;;  %607 = vrot.lane.b32.xlu0 %v1708_v26, %s1547_s10  ;;  %v447_v36 = vpop.f32.mrb[7].mxu0  ;;  %v1117_v41 = vmul.bf16 %v1700_v6, %v1708_v26  ;;  %v591_v48 = vmul.bf16 %v586_v43, %v1708_v26 }
 0x178   : > { %v511_v38 = vadd.f32 %v499_v59, %v479_v30  ;;  %v481_v39 = vmul.f32 %v472_v58, %v447_v36  ;;  %609 = vrot.lane.b32.xlu1 %v1710_v29, %s1547_s10  ;;  %972 = vmatprep.subr.bf16.mxu1 %v1710_v29  ;;  %v1030_v42 = vmul.bf16 %v1025_v32, %v1710_v29  ;;  %v1521_v30 = vunpack.i.l.bf16 %v1520_v22 }
 0x179   : > { %v512_v40 = vadd.f32 %v1688_v60, %v480_v35  ;;  %973 = vmatpush1.bf16.msra.mxu1 %v1708_v26  ;;  %v518_v46 = vmax.f32 %v510_v34, 0.0  ;;  %v791_v49 = vmul.bf16 %v786_v37, %v1708_v26  ;;  %v1118_v52 = vmul.bf16 %v1113_v44, %v1710_v29  ;;  %v1819_v24 = vpop.permute.xlu0 %1524 }
 0x17a   : > { %v513_v45 = vadd.f32 %v1688_v60, %v481_v39  ;;  %v519_v50 = vmax.f32 %v511_v38, 0.0  ;;  %v1029_v55 = vmul.bf16 %v1690_v62, %v1708_v26  ;;  %v592_v60 = vmul.bf16 %v1693_v0, %v1710_v29 }
 0x17b   : > { %v520_v47 = vmax.f32 %v512_v40, 0.0  ;;  %1131 = vrot.lane.b32.xlu0 %v1117_v41, %s1544_s27  ;;  %v792_v63 = vmul.bf16 %v1714_v33, %v1710_v29  ;;  %v1280_v14 = vmul.bf16 %v1273_v10, %v1708_v26 }
 0x17c   : > { %v521_v51 = vmax.f32 %v513_v45, 0.0  ;;  %1207 = vrot.lane.b32.xlu1 %v1710_v29, %s1548_s11 }
 0x17d   : > { %v1740_v53 = vpack.c.bf16 %v520_v47, %v518_v46  ;;  %v1522_v47 = vunpack.i.h.bf16 %v1520_v22 }
 0x17e   : > { %v1742_v54 = vpack.c.bf16 %v521_v51, %v519_v50 }
 0x17f   : > { %1045 = vrot.lane.b32.xlu0 %v1030_v42, %s1545_s28  ;;  %v594_v56 = vmul.bf16 %v586_v43, %v1740_v53  ;;  %v794_v57 = vmul.bf16 %v786_v37, %v1740_v53  ;;  %v1032_v2 = vmul.bf16 %v1690_v62, %v1740_v53  ;;  %v1120_v3 = vmul.bf16 %v1700_v6, %v1740_v53  ;;  %v880_v62 = vpop.permute.xlu1 %879 }
 0x180   : > { %1043 = vrot.lane.b32.xlu1 %v1029_v55, %s1545_s28  ;;  %974 = vmatprep.subr.bf16.mxu1 %v1742_v54  ;;  %v1033_v58 = vmul.bf16 %v1025_v32, %v1742_v54  ;;  %v1121_v59 = vmul.bf16 %v1113_v44, %v1742_v54  ;;  %v595_v5 = vmul.bf16 %v1693_v0, %v1742_v54 }
 0x181   : > { %975 = vmatpush1.bf16.msra.mxu1 %v1740_v53  ;;  %v882_v6 = vsel %vm881_vm7, %v878_v4, %v880_v62  ;;  %v888_v7 = vmul.bf16 %v880_v62, %v1710_v29  ;;  %v795_v13 = vmul.bf16 %v1714_v33, %v1742_v54  ;;  %v891_v17 = vmul.bf16 %v880_v62, %v1742_v54 }
 0x182   : > { %v887_v11 = vmul.bf16 %v882_v6, %v1708_v26  ;;  %v890_v16 = vmul.bf16 %v882_v6, %v1740_v53  ;;  %v1283_v19 = vmul.bf16 %v1273_v10, %v1740_v53 }
 0x183   : > { %681 = vrot.lane.b32.xlu0 %v592_v60, %s1546_s29  ;;  %v1275_v9 = vpop.permute.xlu1 %1274 }
 0x184   : > { %679 = vrot.lane.b32.xlu1 %v591_v48, %s1546_s29  ;;  %1454 = vmatmul.mubr.msk.bf16.vlgmr.msra.gmra.mrb[0].mxu1 %vm626_vm6, %v1453_v61  ;;  %v1282_v12 = vmul.bf16 0, %v1275_v9  ;;  %v1455_v61 = vld [vmem:[%s1914_s6 + $0x14] sm:$0xf] }
 0x185   : > { %1098 = vmatprep.mubr.bf16.mxu1 %v1539_v1 }
 0x187   : > { %808 = vrot.lane.b32.xlu0 %v792_v63, %s1543_s26  ;;  %v1048_v20 = vpop.permute.xlu1 %1047 }
 0x188   : > { %806 = vrot.lane.b32.xlu1 %v791_v49, %s1543_s26 }
 0x18b   : > { %613 = vrot.lane.b32.xlu0 %v1740_v53, %s1547_s10  ;;  %v1054_v21 = vpop.permute.xlu1 %1053 }
 0x18c   : > { %1133 = vrot.lane.b32.xlu1 %v1118_v52, %s1544_s27 }
 0x18f   : > { %1049 = vrot.lane.b32.xlu0 %v1032_v2, %s1545_s28  ;;  %v678_v23 = vpop.permute.xlu1 %677 }
 0x190   : > { %615 = vrot.lane.b32.xlu1 %v1742_v54, %s1547_s10 }
 0x193   : > { %1137 = vrot.lane.b32.xlu0 %v1120_v3, %s1544_s27  ;;  %v1821_v25 = vpop.permute.xlu1 %683 }
 0x194   : > { %685 = vrot.lane.b32.xlu1 %v594_v56, %s1546_s29 }
 0x197   : > { %1051 = vrot.lane.b32.xlu0 %v1033_v58, %s1545_s28  ;;  %v1823_v27 = vpop.permute.xlu1 %804 }
 0x198   : > { %812 = vrot.lane.b32.xlu1 %v794_v57, %s1543_s26 }
 0x19b   : > { %1205 = vrot.lane.b32.xlu0 %v1708_v26, %s1548_s11  ;;  %v1136_v26 = vpop.permute.xlu0 %1135 }
 0x19c   : > { %1213 = vrot.lane.b32.xlu1 %v1742_v54, %s1548_s11 }
 0x19f   : > { %810 = vrot.lane.b32.xlu0 %v790_v8, %s1543_s26  ;;  %v1276_v8 = vsel %vm689_vm8, %v1273_v10, %v1275_v9  ;;  %v1142_v28 = vpop.permute.xlu0 %1141 }
 0x1a0   : > { %1139 = vrot.lane.b32.xlu1 %v1121_v59, %s1544_s27  ;;  %v1281_v0 = vmul.bf16 %v1276_v8, %v1710_v29  ;;  %v1284_v18 = vmul.bf16 %v1276_v8, %v1742_v54 }
 0x1a3   : > { %687 = vrot.lane.b32.xlu0 %v595_v5, %s1546_s29  ;;  %v1526_v5 = vunpack.i.l.bf16 %v1819_v24 }
 0x1a4   : > { %1211 = vrot.lane.b32.xlu1 %v1740_v53, %s1548_s11  ;;  %v1445_v53 = vld [vmem:[%s1914_s6 + $0x4] sm:$0xf] }
 0x1a7   : > { %902 = vrot.lane.b32.xlu0 %v887_v11, %s1541_s19 }
 0x1a8   : > { %904 = vrot.lane.b32.xlu1 %v888_v7, %s1541_s19 }
 0x1ab   : > { %1296 = vrot.lane.b32.xlu0 %v1281_v0, %s1542_s22 }
 0x1ac   : > { %1298 = vrot.lane.b32.xlu1 %v1282_v12, %s1542_s22 }
 0x1af   : > { %814 = vrot.lane.b32.xlu0 %v795_v13, %s1543_s26  ;;  %v1457_v13 = vld [vmem:[%s1914_s6 + $0x18] sm:$0xf] }
 0x1b0   : > { %1294 = vrot.lane.b32.xlu1 %v1280_v14, %s1542_s22  ;;  %v596_v14 = vld [vmem:[%s1914_s6] sm:$0xf] }
 0x1b3   : > { %900 = vrot.lane.b32.xlu0 %v886_v15, %s1541_s19 }
 0x1b4   : > { %1304 = vrot.lane.b32.xlu1 %v1282_v12, %s1542_s22 }
 0x1b7   : > { %908 = vrot.lane.b32.xlu0 %v890_v16, %s1541_s19  ;;  %v1527_v16 = vunpack.i.h.bf16 %v1819_v24 }
 0x1b8   : > { %910 = vrot.lane.b32.xlu1 %v891_v17, %s1541_s19 }
 0x1bb   : > { %1302 = vrot.lane.b32.xlu0 %v1284_v18, %s1542_s22 }
 0x1bc   : > { %1300 = vrot.lane.b32.xlu1 %v1283_v19, %s1542_s22 }
 0x1bf   : > { %906 = vrot.lane.b32.xlu0 %v886_v15, %s1541_s19 }
 0x1e9   : > { %v608_v29 = vpop.permute.xlu0 %607 }
 0x1ea   : > { %v610_v31 = vpop.permute.xlu1 %609  ;;  %v618_v33 = vsel %vm617_vm9, %v1521_v30, %v608_v29  ;;  %v1459_v30 = vld [vmem:[%s1914_s6 + $0x1c] sm:$0xf] }
 0x1eb   : > { %v619_v32 = vsel %vm617_vm9, %v608_v29, %v610_v31  ;;  %v1449_v31 = vld [vmem:[%s1914_s6 + $0x8] sm:$0xf] }
 0x1ec   : > { %630 = vmatprep.subr.bf16.mxu0 %v619_v32 }
 0x1ed   : > { %v1132_v34 = vpop.permute.xlu0 %1131  ;;  %631 = vmatpush1.bf16.msra.mxu0 %v618_v33 }
 0x1ee   : > { %v1827_v35 = vpop.permute.xlu1 %1207 }
 0x1ef   : > { %v1219_v11 = vsel %vm1217_vm10, %v1827_v35, %v1526_v5 }
 0x1f1   : > { %v1046_v36 = vpop.permute.xlu0 %1045 }
 0x1f2   : > { %v1044_v37 = vpop.permute.xlu1 %1043  ;;  %v1056_v38 = vsel %vm881_vm7, %v1046_v36, %v1048_v20 }
 0x1f3   : > { %v1055_v39 = vsel %vm881_vm7, %v1044_v37, %v1046_v36  ;;  %1066 = vmatprep.subr.bf16.mxu1 %v1056_v38 }
 0x1f4   : > { %1067 = vmatpush1.bf16.msra.mxu1 %v1055_v39 }
 0x1f5   : > { %v682_v40 = vpop.permute.xlu0 %681 }
 0x1f6   : > { %v680_v41 = vpop.permute.xlu1 %679 }
 0x1f7   : > { %v691_v52 = vsel %vm689_vm8, %v680_v41, %v682_v40  ;;  %v690_v55 = vsel %vm689_vm8, %v678_v23, %v680_v41 }
 0x1f9   : > { %v809_v42 = vpop.permute.xlu0 %808 }
 0x1fa   : > { %v807_v43 = vpop.permute.xlu1 %806 }
 0x1fb   : > { %v818_v12 = vsel %vm816_vm5, %v807_v43, %v809_v42  ;;  %v817_v18 = vsel %vm816_vm5, %v1823_v27, %v807_v43  ;;  %v1461_v43 = vld [vmem:[%s1914_s6 + $0x20] sm:$0xf] }
 0x1fd   : > { %v614_v44 = vpop.permute.xlu0 %613 }
 0x1fe   : > { %v1134_v45 = vpop.permute.xlu1 %1133  ;;  %v620_v50 = vsel %vm617_vm9, %v1522_v47, %v614_v44 }
 0x1ff   : > { %v1144_v60 = vsel %vm785_vm3, %v1134_v45, %v1136_v26  ;;  %v1143_v3 = vsel %vm785_vm3, %v1132_v34, %v1134_v45 }
 0x201   : > { %v1050_v46 = vpop.permute.xlu0 %1049 }
 0x202   : > { %v616_v48 = vpop.permute.xlu1 %615 }
 0x203   : > { %v621_v49 = vsel %vm617_vm9, %v614_v44, %v616_v48 }
 0x204   : > { %632 = vmatprep.subr.bf16.mxu0 %v621_v49 }
 0x205   : > { %v1138_v51 = vpop.permute.xlu0 %1137  ;;  %633 = vmatpush1.bf16.msra.mxu0 %v620_v50 }
 0x206   : > { %701 = vmatprep.subr.bf16.mxu0 %v691_v52  ;;  %v686_v54 = vpop.permute.xlu1 %685 }
 0x207   : > { %v692_v0 = vsel %vm689_vm8, %v1821_v25, %v686_v54 }
 0x208   : > { %1446 = vmatmul.mubr.msk.bf16.vlgmr.msra.gmra.mrb[8].mxu0 %vm626_vm6, %v1445_v53 }
 0x209   : > { %702 = vmatpush1.bf16.msra.mxu0 %v690_v55  ;;  %v1052_v56 = vpop.permute.xlu0 %1051  ;;  %733 = vmatprep.mubr.bf16.mxu0 %v1539_v1 }
 0x20a   : > { %v1057_v57 = vsel %vm881_vm7, %v1050_v46, %v1052_v56  ;;  %v813_v58 = vpop.permute.xlu1 %812  ;;  %v1058_v59 = vsel %vm881_vm7, %v1052_v56, %v1054_v21 }
 0x20b   : > { %1068 = vmatprep.subr.bf16.mxu1 %v1058_v59 }
 0x20c   : > { %1069 = vmatpush1.bf16.msra.mxu1 %v1057_v57 }
 0x20d   : > { %v1206_v63 = vpop.permute.xlu0 %1205  ;;  %1154 = vmatprep.subr.bf16.mxu1 %v1144_v60 }
 0x20e   : > { %v1214_v2 = vpop.permute.xlu1 %1213  ;;  %v1218_v19 = vsel %vm1217_vm10, %v1206_v63, %v1827_v35 }
 0x20f   : > { %1456 = vmatmul.mubr.msk.bf16.vlgmr.msra.gmra.mrb[0].mxu1 %vm626_vm6, %v1455_v61  ;;  %v1221_v20 = vsel %vm1217_vm10, %v1214_v2, %v1527_v16 }
 0x210   : > { %1155 = vmatpush1.bf16.msra.mxu1 %v1143_v3  ;;  %1186 = vmatprep.mubr.bf16.mxu1 %v1539_v1 }
 0x211   : > { %v811_v62 = vpop.permute.xlu0 %810 }
 0x212   : > { %v1140_v4 = vpop.permute.xlu1 %1139 }
 0x213   : > { %v1145_v6 = vsel %vm785_vm3, %v1138_v51, %v1140_v4  ;;  %v1146_v9 = vsel %vm785_vm3, %v1140_v4, %v1142_v28  ;;  %v819_v28 = vsel %vm816_vm5, %v811_v62, %v813_v58 }
 0x214   : > { %1156 = vmatprep.subr.bf16.mxu1 %v1146_v9 }
 0x215   : > { %1157 = vmatpush1.bf16.msra.mxu1 %v1145_v6  ;;  %v688_v10 = vpop.permute.xlu0 %687 }
 0x216   : > { %v1212_v7 = vpop.permute.xlu1 %1211  ;;  %1229 = vmatprep.subr.bf16.mxu1 %v1219_v11  ;;  %v693_v8 = vsel %vm689_vm8, %v686_v54, %v688_v10 }
 0x217   : > { %703 = vmatprep.subr.bf16.mxu0 %v693_v8  ;;  %v1220_v23 = vsel %vm1217_vm10, %v1212_v7, %v1214_v2 }
 0x218   : > { %704 = vmatpush1.bf16.msra.mxu0 %v692_v0 }
 0x219   : > { %828 = vmatprep.subr.bf16.mxu0 %v818_v12  ;;  %v903_v15 = vpop.permute.xlu0 %902 }
 0x21a   : > { %v905_v17 = vpop.permute.xlu1 %904 }
 0x21b   : > { %1458 = vmatmul.mubr.msk.bf16.vlgmr.msra.gmra.mrb[0].mxu1 %vm626_vm6, %v1457_v13  ;;  %1447 = vmatmul.mubr.msk.bf16.vlgmr.msra.gmra.mrb[8].mxu0 %vm626_vm6, %v596_v14  ;;  %v914_v29 = vsel %vm912_vm2, %v903_v15, %v905_v17 }
 0x21c   : > { %1230 = vmatpush1.bf16.msra.mxu1 %v1218_v19  ;;  %829 = vmatpush1.bf16.msra.mxu0 %v817_v18 }
 0x21d   : > { %1231 = vmatprep.subr.bf16.mxu1 %v1221_v20  ;;  %v1297_v21 = vpop.permute.xlu0 %1296  ;;  %1261 = vmatprep.mubr.bf16.mxu1 %v1539_v1 }
 0x21e   : > { %v1299_v22 = vpop.permute.xlu1 %1298  ;;  %860 = vmatprep.mubr.bf16.mxu0 %v1539_v1 }
 0x21f   : > { %v1307_v24 = vsel %vm585_vm4, %v1297_v21, %v1299_v22 }
 0x220   : > { %1232 = vmatpush1.bf16.msra.mxu1 %v1220_v23 }
 0x221   : > { %1317 = vmatprep.subr.bf16.mxu1 %v1307_v24  ;;  %v815_v25 = vpop.permute.xlu0 %814 }
 0x222   : > { %v1295_v26 = vpop.permute.xlu1 %1294  ;;  %v820_v27 = vsel %vm816_vm5, %v813_v58, %v815_v25 }
 0x223   : > { %830 = vmatprep.subr.bf16.mxu0 %v820_v27  ;;  %v1306_v35 = vsel %vm585_vm4, %v1295_v26, %v1297_v21 }
 0x224   : > { %831 = vmatpush1.bf16.msra.mxu0 %v819_v28 }
 0x225   : > { %924 = vmatprep.subr.bf16.mxu0 %v914_v29  ;;  %v901_v32 = vpop.permute.xlu0 %900 }
 0x226   : > { %v913_v33 = vsel %vm912_vm2, %v901_v32, %v903_v15  ;;  %v1305_v34 = vpop.permute.xlu1 %1304 }
 0x227   : > { %1460 = vmatmul.mubr.msk.bf16.vlgmr.msra.gmra.mrb[0].mxu1 %vm626_vm6, %v1459_v30  ;;  %1450 = vmatmul.mubr.msk.bf16.vlgmr.msra.gmra.mrb[8].mxu0 %vm626_vm6, %v1449_v31 }
 0x228   : > { %1318 = vmatpush1.bf16.msra.mxu1 %v1306_v35  ;;  %925 = vmatpush1.bf16.msra.mxu0 %v913_v33 }
 0x229   : > { %v909_v36 = vpop.permute.xlu0 %908  ;;  %1349 = vmatprep.mubr.bf16.mxu1 %v1539_v1  ;;  %956 = vmatprep.mubr.bf16.mxu0 %v1539_v1  ;;  %v1451_v1 = vld [vmem:[%s1914_s6 + $0xc] sm:$0xf] }
 0x22a   : > { %v911_v37 = vpop.permute.xlu1 %910 }
 0x22b   : > { %v916_v38 = vsel %vm912_vm2, %v909_v36, %v911_v37 }
 0x22c   : > { %926 = vmatprep.subr.bf16.mxu0 %v916_v38 }
 0x22d   : > { %v1303_v39 = vpop.permute.xlu0 %1302 }
 0x22e   : > { %v1301_v40 = vpop.permute.xlu1 %1300  ;;  %v1309_v41 = vsel %vm585_vm4, %v1303_v39, %v1305_v34 }
 0x22f   : > { %v1308_v42 = vsel %vm585_vm4, %v1301_v40, %v1303_v39  ;;  %1319 = vmatprep.subr.bf16.mxu1 %v1309_v41 }
 0x230   : > { %1320 = vmatpush1.bf16.msra.mxu1 %v1308_v42 }
 0x231   : > { %v907_v44 = vpop.permute.xlu0 %906 }
 0x232   : > { %v915_v45 = vsel %vm912_vm2, %v907_v44, %v909_v36 }
 0x233   : > { %927 = vmatpush1.bf16.msra.mxu0 %v915_v45  ;;  %1462 = vmatmul.mubr.msk.bf16.vlgmr.msra.gmra.mrb[0].mxu1 %vm626_vm6, %v1461_v43 }
 0x236   : > { %1452 = vmatmul.mubr.msk.bf16.vlgmr.msra.gmra.mrb[8].mxu0 %vm626_vm6, %v1451_v1 }
 0x306   : > { %v1351_v46 = vpop.f32.mrb[0].mxu1 }
 0x307   : > { %v1353_v47 = vpop.f32.mrb[1].mxu1 }
 0x308   : > { %v1355_v48 = vpop.f32.mrb[2].mxu1 }
 0x309   : > { %v958_v49 = vpop.f32.mrb[8].mxu0  ;;  %v1356_v50 = vpop.f32.mrb[3].mxu1 }
 0x30a   : > { %v1467_v51 = vadd.f32 %v1351_v46, %v958_v49  ;;  %v960_v52 = vpop.f32.mrb[9].mxu0 }
 0x30b   : > { %v1468_v53 = vadd.f32 %v1353_v47, %v960_v52  ;;  %v962_v54 = vpop.f32.mrb[10].mxu0 }
 0x30c   : > { %v1367_v55 = vrot.slane %v1467_v51, 4  ;;  %v963_v56 = vpop.f32.mrb[11].mxu0 }
 0x30d   : > { %v1368_v57 = vrot.slane %v1468_v53, 4 }
 0x30e   : > { %1371 = vst [vmem:[%s1627_s24 + $0x10] ss:$-12 sps:$4 sm:$0xff] %v1367_v55  }
 0x30f   : > { %1372 = vst [vmem:[%s1627_s24 + $0x18] ss:$-12 sps:$4 sm:$0xff] %v1368_v57  }
 0x310 PF: > { %s19_s30 = sadd.s32 1, %s1537_s30  }
 0x311   : > { %p16_p4 = scmp.ge.s32.totalorder %s19_s30, 4  }
 0x313   :  { %18 = sbr.rel (!%p16_p4) target bundleno = 1 (0x1), region = 94 }

</bundles_post_ra>
